<compile_context>
chip_gen: v7x
topology: tpu7x:2x2x1
jax: 0.10.0
libtpu: 0.0.40
codegen_flags: <defaults>
</compile_context>

<pallas_src>
import functools

import jax
import jax.numpy as jnp
import numpy as np
from jax.experimental import pallas as pl
from jax.experimental.pallas import tpu as pltpu

VMEM_LIMIT_BYTES = 48 * 1024 * 1024


def _round_up(x, m):
    return ((x + m - 1) // m) * m


def _pick_tile(dim, candidates):
    for c in candidates:
        if c <= dim and dim % c == 0:
            return c
    return dim  # full-extent block (always legal)


def _num_tc_splits():
    """2 on multi-TensorCore chips (v7x) so the serial recurrence can be
    sharded across cores via the leading 'parallel' grid axis; 1 elsewhere
    (splitting only lengthens the serial chain on single-TC v5e/v6e)."""
    try:
        kind = jax.devices()[0].device_kind.lower()
    except Exception:
        return 1
    return 2 if "v7" in kind else 1


# ----------------------------------------------------------------------------
# Generic tiled matmul + bias:  (M, K) @ (K, N) + (1, N) -> (M, N) f32
# Used for the classifier (large, lane-dense vocab tiles).
# ----------------------------------------------------------------------------
def _matmul_bias_kernel(x_ref, w_ref, b_ref, o_ref, acc_ref):
    @pl.when(pl.program_id(2) == 0)
    def _():
        acc_ref[...] = jnp.zeros_like(acc_ref)

    acc_ref[...] += jnp.dot(x_ref[...], w_ref[...],
                            preferred_element_type=jnp.float32)

    @pl.when(pl.program_id(2) == pl.num_programs(2) - 1)
    def _():
        o_ref[...] = (acc_ref[...] + b_ref[...]).astype(o_ref.dtype)


def matmul_bias(x, w, b):
    """x: (M, K) bf16, w: (K, N) bf16, b: (1, N) f32 -> (M, N) f32."""
    M, K = x.shape
    _, N = w.shape
    tm = _pick_tile(M, (512, 256, 128, 64, 32, 16, 8))
    tn = _pick_tile(N, (1024, 512, 256, 128))   # lane-dense output tile
    tk = _pick_tile(K, (512, 256, 128))
    return pl.pallas_call(
        _matmul_bias_kernel,
        out_shape=jax.ShapeDtypeStruct((M, N), jnp.float32),
        grid_spec=pltpu.PrefetchScalarGridSpec(
            num_scalar_prefetch=0,
            grid=(M // tm, N // tn, K // tk),
            in_specs=[
                pl.BlockSpec((tm, tk), lambda i, j, k: (i, k)),
                pl.BlockSpec((tk, tn), lambda i, j, k: (k, j)),
                pl.BlockSpec((1, tn), lambda i, j, k: (0, j)),
            ],
            out_specs=pl.BlockSpec((tm, tn), lambda i, j, k: (i, j)),
            scratch_shapes=[pltpu.VMEM((tm, tn), jnp.float32)],
        ),
        compiler_params=pltpu.CompilerParams(
            dimension_semantics=("parallel", "parallel", "arbitrary"),
            vmem_limit_bytes=VMEM_LIMIT_BYTES),
    )(x, w, b)


# ----------------------------------------------------------------------------
# One LSTM layer.  Each grid step covers `time_block` timesteps of a slice of
# the (independent) batch rows:
#   1) batched input projection (Ts*Nc, E) @ (E, 4H) into VMEM scratch
#   2) rolled serial recurrence over the Ts timesteps, h/c carried in VMEM f32
# Layer weights are picked out of the stacked (L, ...) HBM tensors by the
# scalar-prefetched layer index, so no wrapper-side slicing is needed.
# ----------------------------------------------------------------------------
def _lstm_layer_kernel(hidden_size, time_block,
                       layer_ref, x_ref, wih_ref, whh_ref, b_ref,
                       hseq_ref, gates_scr, h_scr, c_scr):
    del layer_ref  # only consumed by the index_maps
    H = hidden_size

    @pl.when(pl.program_id(1) == 0)           # new batch slice -> reset state
    def _():
        h_scr[...] = jnp.zeros_like(h_scr)
        c_scr[...] = jnp.zeros_like(c_scr)

    Ts, Nc, E = x_ref.shape
    fourH = wih_ref.shape[-1]

    # Non-recurrent part of all timesteps in this block at once: one big MXU
    # matmul; result parked in VMEM scratch, never written to HBM.
    x_rows = x_ref[...].reshape(Ts * Nc, E)
    gates_in = jnp.dot(x_rows, wih_ref[...],
                       preferred_element_type=jnp.float32) + b_ref[...]
    gates_scr[...] = gates_in.reshape(Ts, Nc, fourH)

    # Serial recurrence: rolled loop (bounds vreg pressure, LLO-visible).
    @pl.loop(0, time_block)
    def _(ts):
        h_prev = h_scr[...]                                       # (Nc, H) f32
        gates = gates_scr[ts] + jnp.dot(
            h_prev.astype(jnp.bfloat16), whh_ref[...],
            preferred_element_type=jnp.float32)                   # (Nc, 4H)
        # PyTorch gate order: i, f, g, o — gate math kept f32 (v5e-safe).
        i_g = jax.nn.sigmoid(gates[:, 0 * H:1 * H])
        f_g = jax.nn.sigmoid(gates[:, 1 * H:2 * H])
        g_g = jnp.tanh(gates[:, 2 * H:3 * H])
        o_g = jax.nn.sigmoid(gates[:, 3 * H:4 * H])
        c_new = f_g * c_scr[...] + i_g * g_g
        h_new = o_g * jnp.tanh(c_new)
        c_scr[...] = c_new
        h_scr[...] = h_new
        hseq_ref[ts] = h_new.astype(hseq_ref.dtype)


def lstm_layer(x, w_ih_t, w_hh_t, b, layer, *, time_block, n_splits):
    """x: (S_pad, N_pad, E) bf16; stacked weights w_ih_t: (L, E, 4H) bf16,
    w_hh_t: (L, H, 4H) bf16, b: (L, 1, 4H) f32.  Returns (S_pad, N_pad, H)
    bf16 hidden sequence of layer `layer`."""
    S_pad, N_pad, E = x.shape
    _, _, fourH = w_ih_t.shape
    H = fourH // 4
    Nc = N_pad // n_splits

    kernel = functools.partial(_lstm_layer_kernel, H, time_block)
    layer_idx = jnp.array([layer], dtype=jnp.int32)

    return pl.pallas_call(
        kernel,
        out_shape=jax.ShapeDtypeStruct((S_pad, N_pad, H), jnp.bfloat16),
        grid_spec=pltpu.PrefetchScalarGridSpec(
            num_scalar_prefetch=1,
            grid=(n_splits, S_pad // time_block),
            in_specs=[
                pl.BlockSpec((time_block, Nc, E), lambda n, t, l: (t, n, 0)),
                pl.BlockSpec((None, E, fourH), lambda n, t, l: (l[0], 0, 0)),
                pl.BlockSpec((None, H, fourH), lambda n, t, l: (l[0], 0, 0)),
                pl.BlockSpec((None, 1, fourH), lambda n, t, l: (l[0], 0, 0)),
            ],
            out_specs=pl.BlockSpec((time_block, Nc, H),
                                   lambda n, t, l: (t, n, 0)),
            scratch_shapes=[
                pltpu.VMEM((time_block, Nc, fourH), jnp.float32),  # gates
                pltpu.VMEM((Nc, H), jnp.float32),                  # h state
                pltpu.VMEM((Nc, H), jnp.float32),                  # c state
            ],
        ),
        compiler_params=pltpu.CompilerParams(
            dimension_semantics=("parallel", "arbitrary"),
            vmem_limit_bytes=VMEM_LIMIT_BYTES),
    )(layer_idx, x, w_ih_t, w_hh_t, b)


# ----------------------------------------------------------------------------
# Parameters (deterministic, synthetic), one-time layout prep, forward pass.
# ----------------------------------------------------------------------------
def init_params(key, vocab_size, embedding_dim, hidden_size, num_layers,
                img_feat_dim):
    # Stacking W_ih across layers requires embedding_dim == hidden_size
    # (true for the original config: 512 / 512).
    assert embedding_dim == hidden_size
    ks = jax.random.split(key, 9)
    s = 0.1
    return dict(
        fc_w=jax.random.normal(ks[0], (embedding_dim, img_feat_dim),
                               jnp.float32) * s,
        fc_b=jax.random.normal(ks[1], (embedding_dim,), jnp.float32) * s,
        emb=jax.random.normal(ks[2], (vocab_size, embedding_dim),
                              jnp.float32) * s,
        w_ih=jax.random.normal(ks[3], (num_layers, 4 * hidden_size,
                                       embedding_dim), jnp.float32) * s,
        w_hh=jax.random.normal(ks[4], (num_layers, 4 * hidden_size,
                                       hidden_size), jnp.float32) * s,
        b_ih=jax.random.normal(ks[5], (num_layers, 4 * hidden_size),
                               jnp.float32) * s,
        b_hh=jax.random.normal(ks[6], (num_layers, 4 * hidden_size),
                               jnp.float32) * s,
        w_cls=jax.random.normal(ks[7], (vocab_size, hidden_size),
                                jnp.float32) * s,
        b_cls=jax.random.normal(ks[8], (vocab_size,), jnp.float32) * s,
    )


def prepare_params(params):
    """One-time weight layout prep (kept OUTSIDE the per-call forward):
    transpose + bf16 cast of the LSTM/classifier weights, bias fusion, and
    vocab padding so the classifier output tile is lane-dense."""
    V, _ = params['w_cls'].shape
    V_pad = _round_up(V, 1024) if V >= 1024 else _round_up(V, 128)
    w_cls_pad = jnp.pad(params['w_cls'], ((0, V_pad - V), (0, 0)))
    b_cls_pad = jnp.pad(params['b_cls'], (0, V_pad - V))
    return dict(
        fc_w=params['fc_w'],
        fc_b=params['fc_b'],
        emb=params['emb'],
        w_ih_t=jnp.transpose(params['w_ih'], (0, 2, 1)).astype(jnp.bfloat16),
        w_hh_t=jnp.transpose(params['w_hh'], (0, 2, 1)).astype(jnp.bfloat16),
        b_lstm=(params['b_ih'] + params['b_hh'])[:, None, :],     # (L, 1, 4H)
        w_cls_t=w_cls_pad.T.astype(jnp.bfloat16),                 # (H, V_pad)
        b_cls=b_cls_pad[None, :],                                 # (1, V_pad)
    )


def caption_model_forward(prep, img_features, trg, *, vocab_size):
    # Thin glue (fc, embedding gather, concat) in plain JAX.
    img = img_features @ prep['fc_w'].T + prep['fc_b']            # (B, E)
    emb = prep['emb'][trg]                                        # (B, T, E)
    inputs = jnp.concatenate([img[:, None, :], emb], axis=1)      # (B, T+1, E)

    # PyTorch nn.LSTM (batch_first=False): axis0 = time (= B), axis1 = batch.
    S, N, _ = inputs.shape
    L, _, fourH = prep['w_ih_t'].shape
    H = fourH // 4

    n_splits = _num_tc_splits()
    TS = 16                                    # timesteps per grid step
    S_pad = _round_up(S, TS)                   # forward-only: trailing pad safe
    N_pad = _round_up(N, 32)                   # halves stay 16-aligned (bf16)

    x = jnp.pad(inputs, ((0, S_pad - S), (0, N_pad - N), (0, 0)))
    x = x.astype(jnp.bfloat16)

    # Layer-major: one layer's weights on-chip at a time; the hidden sequence
    # round-trips HBM in bf16 between layers.
    for layer in range(L):
        x = lstm_layer(x, prep['w_ih_t'], prep['w_hh_t'], prep['b_lstm'],
                       layer, time_block=TS, n_splits=n_splits)

    # Classifier: strip all padding first, then one big lane-dense tiled
    # matmul over the real S*N rows (rows padded only to the row tile).
    M = S * N
    rows = x[:S, :N, :].reshape(M, H)
    M_pad = _round_up(M, 512) if M >= 512 else _round_up(M, 16)
    rows = jnp.pad(rows, ((0, M_pad - M), (0, 0)))
    logits = matmul_bias(rows, prep['w_cls_t'], prep['b_cls'])    # (M_pad,V_pad)
    return logits[:M, :vocab_size].reshape(S, N, vocab_size)      # (B, T+1, V)


def reference_forward(params, img_features, trg):
    """Pure-JAX f32 reference mirroring the PyTorch forward pass."""
    img = img_features @ params['fc_w'].T + params['fc_b']
    emb = params['emb'][trg]
    inputs = jnp.concatenate([img[:, None, :], emb], axis=1)
    S, N, _ = inputs.shape
    L = params['w_ih'].shape[0]
    H = params['w_hh'].shape[-1]
    h = jnp.zeros((L, N, H), jnp.float32)
    c = jnp.zeros((L, N, H), jnp.float32)
    outs = []
    for t in range(S):
        x = inputs[t]
        new_h, new_c = [], []
        for l in range(L):
            gates = (x @ params['w_ih'][l].T + params['b_ih'][l]
                     + h[l] @ params['w_hh'][l].T + params['b_hh'][l])
            i_g = jax.nn.sigmoid(gates[:, 0 * H:1 * H])
            f_g = jax.nn.sigmoid(gates[:, 1 * H:2 * H])
            g_g = jnp.tanh(gates[:, 2 * H:3 * H])
            o_g = jax.nn.sigmoid(gates[:, 3 * H:4 * H])
            cc = f_g * c[l] + i_g * g_g
            hh = o_g * jnp.tanh(cc)
            new_c.append(cc)
            new_h.append(hh)
            x = hh
        h = jnp.stack(new_h)
        c = jnp.stack(new_c)
        outs.append(x @ params['w_cls'].T + params['b_cls'])
    return jnp.stack(outs)


# TODO(synk): CaptionModel.generate()/beam_search is host-side control flow
# (heaps, Python lists) and is not expressible as a Pallas kernel.

if __name__ == "__main__":
    # Small synthetic config (original: vocab=clip vocab, E=H=512, L=32,
    # img feature dim=512).
    B, T = 2, 8
    EMB = HID = 32
    NUM_LAYERS = 2
    VOCAB = 48
    IMG_DIM = 32  # stands in for the hard-coded 512 of nn.Linear(512, E)

    key = jax.random.PRNGKey(0)
    kp, ki, kt = jax.random.split(key, 3)
    params = init_params(kp, VOCAB, EMB, HID, NUM_LAYERS, IMG_DIM)
    prep = prepare_params(params)   # one-time weight prep, outside the forward

    img_features = jax.random.normal(ki, (B, IMG_DIM), jnp.float32)
    trg = jax.random.randint(kt, (B, T), 0, VOCAB, dtype=jnp.int32)

    fwd = jax.jit(functools.partial(caption_model_forward, vocab_size=VOCAB))
    out = jax.block_until_ready(fwd(prep, img_features, trg))  # (B, T+1, V)

    ref = reference_forward(params, img_features, trg)
    # bf16 matmul inputs (f32 accumulation) -> loosened tolerance vs f32 ref.
    np.testing.assert_allclose(np.asarray(out), np.asarray(ref),
                               rtol=5e-2, atol=5e-2)
    assert out.shape == (B, T + 1, VOCAB)
    print("KERNEL_OK")
</pallas_src>

<mosaic_0001>
module attributes {stable_mosaic.version = 11 : i64} {
  func.func @_matmul_bias_kernel(%arg0: i32, %arg1: i32, %arg2: i32, %arg3: memref<32x32xbf16, #tpu.memory_space<vmem>>, %arg4: memref<32x128xbf16, #tpu.memory_space<vmem>>, %arg5: memref<1x128xf32, #tpu.memory_space<vmem>>, %arg6: memref<32x128xf32, #tpu.memory_space<vmem>>, %arg7: memref<32x128xf32, #tpu.memory_space<vmem>>) attributes {dimension_semantics = [#tpu.dimension_semantics<parallel>, #tpu.dimension_semantics<parallel>, #tpu.dimension_semantics<arbitrary>], iteration_bounds = array<i64: 1, 1, 1>, scalar_prefetch = 0 : i64, scratch_operands = 1 : i64, tpu.core_type = #tpu.core_type<tc>, window_params = [{transform_indices = @transform_0, window_bounds = array<i64: 32, 32>}, {transform_indices = @transform_1, window_bounds = array<i64: 32, 128>}, {transform_indices = @transform_2, window_bounds = array<i64: 1, 128>}, {transform_indices = @transform_3, window_bounds = array<i64: 32, 128>}]} {
    %c0_i32 = arith.constant 0 : i32
    %0 = arith.cmpi eq, %arg2, %c0_i32 : i32
    %1 = arith.extui %0 : i1 to i32
    %c0_i32_0 = arith.constant 0 : i32
    %2 = arith.cmpi ne, %1, %c0_i32_0 : i32
    scf.if %2 {
      %cst_10 = arith.constant 0.000000e+00 : f32
      %12 = vector.broadcast %cst_10 : f32 to vector<32x128xf32>
      %c0_11 = arith.constant 0 : index
      %c0_12 = arith.constant 0 : index
      %13 = vector.load %arg7[%c0_11, %c0_12] : memref<32x128xf32, #tpu.memory_space<vmem>>, vector<32x128xf32>
      tpu.vector_store %arg7[%c0_11, %c0_12], %12 {strides = array<i32>} : memref<32x128xf32, #tpu.memory_space<vmem>>, vector<32x128xf32>,
    } else {
    }
    %c0 = arith.constant 0 : index
    %c0_1 = arith.constant 0 : index
    %3 = vector.load %arg7[%c0, %c0_1] : memref<32x128xf32, #tpu.memory_space<vmem>>, vector<32x128xf32>
    %c0_2 = arith.constant 0 : index
    %c0_3 = arith.constant 0 : index
    %4 = vector.load %arg3[%c0_2, %c0_3] : memref<32x32xbf16, #tpu.memory_space<vmem>>, vector<32x32xbf16>
    %c0_4 = arith.constant 0 : index
    %c0_5 = arith.constant 0 : index
    %5 = vector.load %arg4[%c0_4, %c0_5] : memref<32x128xbf16, #tpu.memory_space<vmem>>, vector<32x128xbf16>
    %cst = arith.constant dense<0.000000e+00> : vector<32x128xf32>
    %6 = tpu.matmul %4, %5, %cst {dimension_numbers = #tpu.dot_dimension_numbers<[1], [0], [0], [1], [0, 0, 1, 1], [], []>} : vector<32x32xbf16>, vector<32x128xbf16>, vector<32x128xf32> -> vector<32x128xf32>
    %7 = arith.addf %3, %6 : vector<32x128xf32>
    %c0_6 = arith.constant 0 : index
    %c0_7 = arith.constant 0 : index
    %8 = vector.load %arg7[%c0_6, %c0_7] : memref<32x128xf32, #tpu.memory_space<vmem>>, vector<32x128xf32>
    tpu.vector_store %arg7[%c0_6, %c0_7], %7 {strides = array<i32>} : memref<32x128xf32, #tpu.memory_space<vmem>>, vector<32x128xf32>,
    %c0_i32_8 = arith.constant 0 : i32
    %9 = arith.cmpi eq, %arg2, %c0_i32_8 : i32
    %10 = arith.extui %9 : i1 to i32
    %c0_i32_9 = arith.constant 0 : i32
    %11 = arith.cmpi ne, %10, %c0_i32_9 : i32
    scf.if %11 {
      %c0_10 = arith.constant 0 : index
      %c0_11 = arith.constant 0 : index
      %12 = vector.load %arg7[%c0_10, %c0_11] : memref<32x128xf32, #tpu.memory_space<vmem>>, vector<32x128xf32>
      %c0_12 = arith.constant 0 : index
      %c0_13 = arith.constant 0 : index
      %13 = vector.load %arg5[%c0_12, %c0_13] : memref<1x128xf32, #tpu.memory_space<vmem>>, vector<1x128xf32>
      %14 = vector.broadcast %13 : vector<1x128xf32> to vector<32x128xf32>
      %15 = arith.addf %12, %14 : vector<32x128xf32>
      %c0_14 = arith.constant 0 : index
      %c0_15 = arith.constant 0 : index
      %16 = vector.load %arg6[%c0_14, %c0_15] : memref<32x128xf32, #tpu.memory_space<vmem>>, vector<32x128xf32>
      tpu.vector_store %arg6[%c0_14, %c0_15], %15 {strides = array<i32>} : memref<32x128xf32, #tpu.memory_space<vmem>>, vector<32x128xf32>,
    } else {
    }
    return
  }
  func.func @transform_0(%arg0: i32, %arg1: i32, %arg2: i32) -> (i32, i32) {
    %c0_i32 = arith.constant 0 : i32
    return %arg0, %arg2 : i32, i32
  }
  func.func @transform_1(%arg0: i32, %arg1: i32, %arg2: i32) -> (i32, i32) {
    %c0_i32 = arith.constant 0 : i32
    return %arg2, %arg1 : i32, i32
  }
  func.func @transform_2(%arg0: i32, %arg1: i32, %arg2: i32) -> (i32, i32) {
    %c0_i32 = arith.constant 0 : i32
    %c0_i32_0 = arith.constant 0 : i32
    return %c0_i32, %arg1 : i32, i32
  }
  func.func @transform_3(%arg0: i32, %arg1: i32, %arg2: i32) -> (i32, i32) {
    %c0_i32 = arith.constant 0 : i32
    return %arg0, %arg1 : i32, i32
  }
}

module attributes {stable_mosaic.version = 11 : i64} {
  func.func @_lstm_layer_kernel(%arg0: i32, %arg1: i32, %arg2: memref<1xi32, #tpu.memory_space<smem>>, %arg3: memref<16x32x32xbf16, #tpu.memory_space<vmem>>, %arg4: memref<1x32x128xbf16, #tpu.memory_space<vmem>>, %arg5: memref<1x32x128xbf16, #tpu.memory_space<vmem>>, %arg6: memref<1x1x128xf32, #tpu.memory_space<vmem>>, %arg7: memref<16x32x32xbf16, #tpu.memory_space<vmem>>, %arg8: memref<16x32x128xf32, #tpu.memory_space<vmem>>, %arg9: memref<32x32xf32, #tpu.memory_space<vmem>>, %arg10: memref<32x32xf32, #tpu.memory_space<vmem>>) attributes {dimension_semantics = [#tpu.dimension_semantics<parallel>, #tpu.dimension_semantics<arbitrary>], iteration_bounds = array<i64: 1, 1>, scalar_prefetch = 1 : i64, scratch_operands = 3 : i64, tpu.core_type = #tpu.core_type<tc>, window_params = [{transform_indices = @transform_0, window_bounds = array<i64: 16, 32, 32>}, {transform_indices = @transform_1, window_bounds = array<i64: 1, 32, 128>}, {transform_indices = @transform_2, window_bounds = array<i64: 1, 32, 128>}, {transform_indices = @transform_3, window_bounds = array<i64: 1, 1, 128>}, {transform_indices = @transform_4, window_bounds = array<i64: 16, 32, 32>}]} {
    %c0_i32 = arith.constant 0 : i32
    %0 = arith.cmpi eq, %arg1, %c0_i32 : i32
    %1 = arith.extui %0 : i1 to i32
    %c0_i32_0 = arith.constant 0 : i32
    %2 = arith.cmpi ne, %1, %c0_i32_0 : i32
    scf.if %2 {
      %cst_14 = arith.constant 0.000000e+00 : f32
      %15 = vector.broadcast %cst_14 : f32 to vector<32x32xf32>
      %c0_15 = arith.constant 0 : index
      %c0_16 = arith.constant 0 : index
      %16 = vector.load %arg9[%c0_15, %c0_16] : memref<32x32xf32, #tpu.memory_space<vmem>>, vector<32x32xf32>
      tpu.vector_store %arg9[%c0_15, %c0_16], %15 {strides = array<i32>} : memref<32x32xf32, #tpu.memory_space<vmem>>, vector<32x32xf32>,
      %cst_17 = arith.constant 0.000000e+00 : f32
      %17 = vector.broadcast %cst_17 : f32 to vector<32x32xf32>
      %c0_18 = arith.constant 0 : index
      %c0_19 = arith.constant 0 : index
      %18 = vector.load %arg10[%c0_18, %c0_19] : memref<32x32xf32, #tpu.memory_space<vmem>>, vector<32x32xf32>
      tpu.vector_store %arg10[%c0_18, %c0_19], %17 {strides = array<i32>} : memref<32x32xf32, #tpu.memory_space<vmem>>, vector<32x32xf32>,
    } else {
    }
    %c0 = arith.constant 0 : index
    %c0_1 = arith.constant 0 : index
    %c0_2 = arith.constant 0 : index
    %3 = vector.load %arg3[%c0, %c0_1, %c0_2] : memref<16x32x32xbf16, #tpu.memory_space<vmem>>, vector<16x32x32xbf16>
    %4 = vector.shape_cast %3 : vector<16x32x32xbf16> to vector<512x32xbf16>
    %c0_3 = arith.constant 0 : index
    %c0_4 = arith.constant 0 : index
    %c0_5 = arith.constant 0 : index
    %5 = vector.load %arg4[%c0_3, %c0_4, %c0_5] : memref<1x32x128xbf16, #tpu.memory_space<vmem>>, vector<1x32x128xbf16>
    %6 = vector.shape_cast %5 : vector<1x32x128xbf16> to vector<32x128xbf16>
    %cst = arith.constant dense<0.000000e+00> : vector<512x128xf32>
    %7 = tpu.matmul %4, %6, %cst {dimension_numbers = #tpu.dot_dimension_numbers<[1], [0], [0], [1], [0, 0, 1, 1], [], []>} : vector<512x32xbf16>, vector<32x128xbf16>, vector<512x128xf32> -> vector<512x128xf32>
    %c0_6 = arith.constant 0 : index
    %c0_7 = arith.constant 0 : index
    %c0_8 = arith.constant 0 : index
    %8 = vector.load %arg6[%c0_6, %c0_7, %c0_8] : memref<1x1x128xf32, #tpu.memory_space<vmem>>, vector<1x1x128xf32>
    %9 = vector.shape_cast %8 : vector<1x1x128xf32> to vector<1x128xf32>
    %10 = vector.broadcast %9 : vector<1x128xf32> to vector<512x128xf32>
    %11 = arith.addf %7, %10 : vector<512x128xf32>
    %12 = vector.shape_cast %11 : vector<512x128xf32> to vector<16x32x128xf32>
    %c0_9 = arith.constant 0 : index
    %c0_10 = arith.constant 0 : index
    %c0_11 = arith.constant 0 : index
    %13 = vector.load %arg8[%c0_9, %c0_10, %c0_11] : memref<16x32x128xf32, #tpu.memory_space<vmem>>, vector<16x32x128xf32>
    tpu.vector_store %arg8[%c0_9, %c0_10, %c0_11], %12 {strides = array<i32>} : memref<16x32x128xf32, #tpu.memory_space<vmem>>, vector<16x32x128xf32>,
    %c0_i32_12 = arith.constant 0 : i32
    %c16_i32 = arith.constant 16 : i32
    %14 = arith.addi %c0_i32_12, %c16_i32 : i32
    %c1_i32 = arith.constant 1 : i32
    scf.for %arg11 = %c0_i32_12 to %14 step %c1_i32  : i32 {
      %c1_i32_14 = arith.constant 1 : i32
      %15 = arith.muli %arg11, %c1_i32_14 : i32
      %c0_i32_15 = arith.constant 0 : i32
      %16 = arith.addi %c0_i32_15, %15 : i32
      %c0_16 = arith.constant 0 : index
      %c0_17 = arith.constant 0 : index
      %17 = vector.load %arg9[%c0_16, %c0_17] : memref<32x32xf32, #tpu.memory_space<vmem>>, vector<32x32xf32>
      %18 = arith.index_cast %16 : i32 to index
      %c0_18 = arith.constant 0 : index
      %c0_19 = arith.constant 0 : index
      %19 = vector.load %arg8[%18, %c0_18, %c0_19] : memref<16x32x128xf32, #tpu.memory_space<vmem>>, vector<1x32x128xf32>
      %20 = vector.shape_cast %19 : vector<1x32x128xf32> to vector<32x128xf32>
      %21 = arith.truncf %17 : vector<32x32xf32> to vector<32x32xbf16>
      %c0_20 = arith.constant 0 : index
      %c0_21 = arith.constant 0 : index
      %c0_22 = arith.constant 0 : index
      %22 = vector.load %arg5[%c0_20, %c0_21, %c0_22] : memref<1x32x128xbf16, #tpu.memory_space<vmem>>, vector<1x32x128xbf16>
      %23 = vector.shape_cast %22 : vector<1x32x128xbf16> to vector<32x128xbf16>
      %cst_23 = arith.constant dense<0.000000e+00> : vector<32x128xf32>
      %24 = tpu.matmul %21, %23, %cst_23 {dimension_numbers = #tpu.dot_dimension_numbers<[1], [0], [0], [1], [0, 0, 1, 1], [], []>} : vector<32x32xbf16>, vector<32x128xbf16>, vector<32x128xf32> -> vector<32x128xf32>
      %25 = arith.addf %20, %24 : vector<32x128xf32>
      %26 = vector.extract_strided_slice %25 {offsets = [0, 0], sizes = [32, 32], strides = [1, 1]} : vector<32x128xf32> to vector<32x32xf32>
      %27 = arith.negf %26 : vector<32x32xf32>
      %28 = math.exp %27 : vector<32x32xf32>
      %cst_24 = arith.constant 1.000000e+00 : f32
      %29 = vector.broadcast %cst_24 : f32 to vector<32x32xf32>
      %30 = arith.addf %29, %28 : vector<32x32xf32>
      %31 = arith.divf %29, %30 : vector<32x32xf32>
      %32 = vector.extract_strided_slice %25 {offsets = [0, 32], sizes = [32, 32], strides = [1, 1]} : vector<32x128xf32> to vector<32x32xf32>
      %33 = arith.negf %32 : vector<32x32xf32>
      %34 = math.exp %33 : vector<32x32xf32>
      %cst_25 = arith.constant 1.000000e+00 : f32
      %35 = vector.broadcast %cst_25 : f32 to vector<32x32xf32>
      %36 = arith.addf %35, %34 : vector<32x32xf32>
      %37 = arith.divf %35, %36 : vector<32x32xf32>
      %38 = vector.extract_strided_slice %25 {offsets = [0, 64], sizes = [32, 32], strides = [1, 1]} : vector<32x128xf32> to vector<32x32xf32>
      %39 = math.tanh %38 : vector<32x32xf32>
      %40 = vector.extract_strided_slice %25 {offsets = [0, 96], sizes = [32, 32], strides = [1, 1]} : vector<32x128xf32> to vector<32x32xf32>
      %41 = arith.negf %40 : vector<32x32xf32>
      %42 = math.exp %41 : vector<32x32xf32>
      %cst_26 = arith.constant 1.000000e+00 : f32
      %43 = vector.broadcast %cst_26 : f32 to vector<32x32xf32>
      %44 = arith.addf %43, %42 : vector<32x32xf32>
      %45 = arith.divf %43, %44 : vector<32x32xf32>
      %c0_27 = arith.constant 0 : index
      %c0_28 = arith.constant 0 : index
      %46 = vector.load %arg10[%c0_27, %c0_28] : memref<32x32xf32, #tpu.memory_space<vmem>>, vector<32x32xf32>
      %47 = arith.mulf %37, %46 : vector<32x32xf32>
      %48 = arith.mulf %31, %39 : vector<32x32xf32>
      %49 = arith.addf %47, %48 : vector<32x32xf32>
      %50 = math.tanh %49 : vector<32x32xf32>
      %51 = arith.mulf %45, %50 : vector<32x32xf32>
      %c0_29 = arith.constant 0 : index
      %c0_30 = arith.constant 0 : index
      %52 = vector.load %arg10[%c0_29, %c0_30] : memref<32x32xf32, #tpu.memory_space<vmem>>, vector<32x32xf32>
      tpu.vector_store %arg10[%c0_29, %c0_30], %49 {strides = array<i32>} : memref<32x32xf32, #tpu.memory_space<vmem>>, vector<32x32xf32>,
      %c0_31 = arith.constant 0 : index
      %c0_32 = arith.constant 0 : index
      %53 = vector.load %arg9[%c0_31, %c0_32] : memref<32x32xf32, #tpu.memory_space<vmem>>, vector<32x32xf32>
      tpu.vector_store %arg9[%c0_31, %c0_32], %51 {strides = array<i32>} : memref<32x32xf32, #tpu.memory_space<vmem>>, vector<32x32xf32>,
      %54 = arith.truncf %51 : vector<32x32xf32> to vector<32x32xbf16>
      %55 = arith.index_cast %16 : i32 to index
      %c0_33 = arith.constant 0 : index
      %c0_34 = arith.constant 0 : index
      %56 = vector.load %arg7[%55, %c0_33, %c0_34] : memref<16x32x32xbf16, #tpu.memory_space<vmem>>, vector<1x32x32xbf16>
      %57 = vector.shape_cast %56 : vector<1x32x32xbf16> to vector<32x32xbf16>
      %58 = vector.shape_cast %54 : vector<32x32xbf16> to vector<1x32x32xbf16>
      tpu.vector_store %arg7[%55, %c0_33, %c0_34], %58 {strides = array<i32>} : memref<16x32x32xbf16, #tpu.memory_space<vmem>>, vector<1x32x32xbf16>,
    }
    %c16_i32_13 = arith.constant 16 : i32
    return
  }
  func.func @transform_0(%arg0: i32, %arg1: i32, %arg2: memref<1xi32, #tpu.memory_space<smem>>) -> (i32, i32, i32) {
    %c0_i32 = arith.constant 0 : i32
    %c0_i32_0 = arith.constant 0 : i32
    return %arg1, %arg0, %c0_i32 : i32, i32, i32
  }
  func.func @transform_1(%arg0: i32, %arg1: i32, %arg2: memref<1xi32, #tpu.memory_space<smem>>) -> (i32, i32, i32) {
    %c0 = arith.constant 0 : index
    %0 = memref.load %arg2[%c0] : memref<1xi32, #tpu.memory_space<smem>>
    %c0_i32 = arith.constant 0 : i32
    %c0_i32_0 = arith.constant 0 : i32
    %c0_i32_1 = arith.constant 0 : i32
    return %0, %c0_i32, %c0_i32_0 : i32, i32, i32
  }
  func.func @transform_2(%arg0: i32, %arg1: i32, %arg2: memref<1xi32, #tpu.memory_space<smem>>) -> (i32, i32, i32) {
    %c0 = arith.constant 0 : index
    %0 = memref.load %arg2[%c0] : memref<1xi32, #tpu.memory_space<smem>>
    %c0_i32 = arith.constant 0 : i32
    %c0_i32_0 = arith.constant 0 : i32
    %c0_i32_1 = arith.constant 0 : i32
    return %0, %c0_i32, %c0_i32_0 : i32, i32, i32
  }
  func.func @transform_3(%arg0: i32, %arg1: i32, %arg2: memref<1xi32, #tpu.memory_space<smem>>) -> (i32, i32, i32) {
    %c0 = arith.constant 0 : index
    %0 = memref.load %arg2[%c0] : memref<1xi32, #tpu.memory_space<smem>>
    %c0_i32 = arith.constant 0 : i32
    %c0_i32_0 = arith.constant 0 : i32
    %c0_i32_1 = arith.constant 0 : i32
    return %0, %c0_i32, %c0_i32_0 : i32, i32, i32
  }
  func.func @transform_4(%arg0: i32, %arg1: i32, %arg2: memref<1xi32, #tpu.memory_space<smem>>) -> (i32, i32, i32) {
    %c0_i32 = arith.constant 0 : i32
    %c0_i32_0 = arith.constant 0 : i32
    return %arg1, %arg0, %c0_i32 : i32, i32, i32
  }
}

</mosaic_0001>

<bundles_post_ra>
// kernel: caption_model_forward.5
= control target key start
LH: loop header
LB: loop body
LE: loop exit
PB: predicated region body
PF: predicated region fallthrough
CT: control target
= control target key end

     0   :  { %vm57_vm0 = vcmask 261120   ;;  %s217_s1 = inlined_call_operand.vmem [shape: bf16[32,128], index: 1, kind: input, shape index: {}]   ;;  %s218_s0 = inlined_call_operand.vmem [shape: bf16[32,32], index: 0, kind: input, shape index: {}]   ;;  %s219_s2 = inlined_call_operand.vmem [shape: f32[1,128], index: 2, kind: input, shape index: {}]   ;;  %s220_s3 = inlined_call_operand.vmem [shape: f32[32,128], index: 3, kind: output, shape index: {}]  }
   0x1   :  { %v166_v0 = vld [vmem:[%s217_s1] sm:$0xff]   ;;  %v167_v1 = vld [vmem:[%s217_s1 + $0x8] sm:$0xff]  }
   0x2   :  { %158 = vmatprep.subr.bf16.mxu0 %v166_v0  ;;  %v168_v2 = vld [vmem:[%s218_s0] sm:$0xff]   ;;  %v169_v3 = vld [vmem:[%s218_s0 + $0x8] sm:$0xff]  }
   0x3   :  { %159 = vmatpush3.bf16.msra.mxu0 %v166_v0  ;;  %162 = vmatprep.mubr.msk.bf16.mxu0 %vm57_vm0, %v168_v2  ;;  %v153_v4 = vld [vmem:[%s219_s2] ss:$0 sm:$0xff] }
   0x4   :  { %160 = vmatprep.subr.bf16.mxu0 %v167_v1 }
   0x7   :  { %161 = vmatpush3.bf16.msra.mxu0 %v167_v1 }
   0xa   :  { %163 = vmatmul.mubr.msk.bf16.vlgmr.msra.gmra.mrb[0].mxu0 %vm57_vm0, %v169_v3 }
  0xdd   :  { %v164_v5 = vpop.f32.mrb[0].mxu0 }
  0xde   :  { %v137_v6 = vadd.f32 %v164_v5, %v153_v4  ;;  %v98_v7 = vpop.f32.mrb[1].mxu0 }
  0xdf   :  { %v135_v8 = vadd.f32 %v153_v4, %v98_v7  ;;  %v165_v9 = vpop.f32.mrb[2].mxu0 }
  0xe0   :  { %141 = vst [vmem:[%s220_s3 + $0x10] sm:$0xff] %v137_v6  ;;  %v138_v10 = vadd.f32 %v165_v9, %v153_v4  ;;  %v101_v11 = vpop.f32.mrb[3].mxu0 }
  0xe1   :  { %139 = vst [vmem:[%s220_s3] sm:$0xff] %v135_v8  ;;  %v136_v12 = vadd.f32 %v153_v4, %v101_v11 }
  0xe2   :  { %142 = vst [vmem:[%s220_s3 + $0x18] sm:$0xff] %v138_v10 }
  0xe3   :  { %140 = vst [vmem:[%s220_s3 + $0x8] sm:$0xff] %v136_v12 }

// kernel: caption_model_forward.3
= control target key start
LH: loop header
LB: loop body
LE: loop exit
PB: predicated region body
PF: predicated region fallthrough
CT: control target
= control target key end

     0   :  { %vm78_vm0 = vcmask 261120   ;;  %v1392_v0 = vmov 0.0   ;;  %s1702_s0 = inlined_call_operand.<no memory space> [shape: s32[1], index: 0, kind: input, shape index: {}]   ;;  %s1703_s5 = inlined_call_operand.vmem [shape: bf16[16,32,32], index: 5, kind: output, shape index: {}]   ;;  %s1704_s1 = inlined_call_operand.vmem [shape: bf16[16,32,32], index: 1, kind: input, shape index: {}]   ;;  %s1705_s2 = inlined_call_operand.vmem [shape: bf16[2,32,128], index: 2, kind: input, shape index: {}]   ;;  %s1706_s3 = inlined_call_operand.vmem [shape: bf16[2,32,128], index: 3, kind: input, shape index: {}]   ;;  %s1707_s4 = inlined_call_operand.vmem [shape: f32[2,1,128], index: 4, kind: input, shape index: {}]  }
   0x1   :  { %p55_p0 = scmp.lt.s32.totalorder %s1702_s0, 1  ;;  %79 = vst.msk [vmem:[#allocation3] sm:$0xff] %vm78_vm0, %v1392_v0  ;;  %80 = vst.msk [vmem:[#allocation3 + $0x8] sm:$0xff] %vm78_vm0, %v1392_v0  ;;  %v1318_v1 = vld [vmem:[%s1704_s1] sm:$0xff]   ;;  %v1320_v5 = vld [vmem:[%s1704_s1 + $0x8] sm:$0xff]  }
   0x2   :  { %81 = vst.msk [vmem:[#allocation3 + $0x10] sm:$0xff] %vm78_vm0, %v1392_v0  ;;  %82 = vst.msk [vmem:[#allocation3 + $0x18] sm:$0xff] %vm78_vm0, %v1392_v0  ;;  %v1319_v2 = vld [vmem:[%s1704_s1 + $0x80] sm:$0xff]   ;;  %1228 = vmatprep.mubr.msk.bf16.mxu0 %vm78_vm0, %v1318_v1  ;;  %v1321_v6 = vld [vmem:[%s1704_s1 + $0x88] sm:$0xff]  }
   0x3   :  { %83 = vst.msk [vmem:[#allocation4] sm:$0xff] %vm78_vm0, %v1392_v0  ;;  %84 = vst.msk [vmem:[#allocation4 + $0x8] sm:$0xff] %vm78_vm0, %v1392_v0  ;;  %s1709_s0 = smov (!%p55_p0, %s1702_s0), 1  ;;  %1260 = vmatprep.mubr.msk.bf16.mxu1 %vm78_vm0, %v1319_v2  ;;  %v1322_v7 = vld [vmem:[%s1704_s1 + $0x10] sm:$0xff]   ;;  %v1324_v9 = vld [vmem:[%s1704_s1 + $0x18] sm:$0xff]  }
   0x4   :  { %85 = vst.msk [vmem:[#allocation4 + $0x10] sm:$0xff] %vm78_vm0, %v1392_v0  ;;  %86 = vst.msk [vmem:[#allocation4 + $0x18] sm:$0xff] %vm78_vm0, %v1392_v0  ;;  %s1179_s28 = sshll.u32 %s1709_s0, 4  ;;  %v1323_v8 = vld [vmem:[%s1704_s1 + $0x90] sm:$0xff]   ;;  %v1325_v10 = vld [vmem:[%s1704_s1 + $0x98] sm:$0xff]   ;;  %s71_s18 = scalar_lea.vmem %s1707_s4, %s1709_s0 }
   0x5   :  { %s59_s6 = scalar_lea.vmem %s1705_s2, %s1179_s28  ;;  %s1461_s9 = scalar_lea.vmem %s1706_s3, %s1179_s28  ;;  %v1326_v11 = vld [vmem:[%s1704_s1 + $0x20] sm:$0xff]   ;;  %v1328_v13 = vld [vmem:[%s1704_s1 + $0x28] sm:$0xff]   ;;  %v1330_v15 = vld [vmem:[%s1704_s1 + $0x30] sm:$0xff]  }
   0x6   :  { %v1316_v3 = vld [vmem:[%s59_s6] sm:$0xff]   ;;  %v1317_v4 = vld [vmem:[%s59_s6 + $0x8] sm:$0xff]   ;;  %v1331_v16 = vld [vmem:[%s1704_s1 + $0xb0] sm:$0xff]   ;;  %s1653_s0 = smov 0  }
   0x7   :  { %1224 = vmatprep.subr.bf16.mxu0 %v1316_v3  ;;  %1300 = vmatprep.subr.bf16.mxu1 %v1316_v3  ;;  %v1327_v12 = vld [vmem:[%s1704_s1 + $0xa0] sm:$0xff]   ;;  %v1329_v14 = vld [vmem:[%s1704_s1 + $0xa8] sm:$0xff]   ;;  %v1332_v17 = vld [vmem:[%s1704_s1 + $0x38] sm:$0xff]  }
   0x8   :  { %1225 = vmatpush3.bf16.msra.mxu0 %v1316_v3  ;;  %1302 = vmatpush3.bf16.msra.mxu1 %v1316_v3  ;;  %v1333_v18 = vld [vmem:[%s1704_s1 + $0xb8] sm:$0xff]   ;;  %v1334_v19 = vld [vmem:[%s1704_s1 + $0x40] sm:$0xff]   ;;  %v1336_v21 = vld [vmem:[%s1704_s1 + $0x48] sm:$0xff]  }
   0x9   :  { %1226 = vmatprep.subr.bf16.mxu0 %v1317_v4  ;;  %1301 = vmatprep.subr.bf16.mxu1 %v1317_v4  ;;  %v1335_v20 = vld [vmem:[%s1704_s1 + $0xc0] sm:$0xff]   ;;  %v1337_v22 = vld [vmem:[%s1704_s1 + $0xc8] sm:$0xff]   ;;  %v1338_v23 = vld [vmem:[%s1704_s1 + $0x50] sm:$0xff]  }
   0xa   :  { %v1339_v24 = vld [vmem:[%s1704_s1 + $0xd0] sm:$0xff]   ;;  %v1340_v25 = vld [vmem:[%s1704_s1 + $0x58] sm:$0xff]   ;;  %v1342_v27 = vld [vmem:[%s1704_s1 + $0x60] sm:$0xff]  }
   0xb   :  { %v1341_v26 = vld [vmem:[%s1704_s1 + $0xd8] sm:$0xff]   ;;  %v1343_v28 = vld [vmem:[%s1704_s1 + $0xe0] sm:$0xff]   ;;  %v1344_v29 = vld [vmem:[%s1704_s1 + $0x68] sm:$0xff]  }
   0xc   :  { %1227 = vmatpush3.bf16.msra.mxu0 %v1317_v4  ;;  %1303 = vmatpush3.bf16.msra.mxu1 %v1317_v4  ;;  %v1345_v30 = vld [vmem:[%s1704_s1 + $0xe8] sm:$0xff]   ;;  %v1346_v31 = vld [vmem:[%s1704_s1 + $0x70] sm:$0xff]   ;;  %v1348_v33 = vld [vmem:[%s1704_s1 + $0x78] sm:$0xff]  }
   0xd   :  { %v1347_v32 = vld [vmem:[%s1704_s1 + $0xf0] sm:$0xff]   ;;  %v1349_v34 = vld [vmem:[%s1704_s1 + $0xf8] sm:$0xff]   ;;  %v1587_v35 = vld [vmem:[%s71_s18] ss:$0 sm:$0xff] }
   0xf   :  { %1229 = vmatmul.mubr.msk.bf16.vlgmr.msra.gmra.mrb[0].mxu0 %vm78_vm0, %v1320_v5  ;;  %1261 = vmatmul.mubr.msk.bf16.vlgmr.msra.gmra.mrb[0].mxu1 %vm78_vm0, %v1321_v6 }
  0x10   :  { %1232 = vmatprep.mubr.msk.bf16.mxu0 %vm78_vm0, %v1322_v7  ;;  %1264 = vmatprep.mubr.msk.bf16.mxu1 %vm78_vm0, %v1323_v8 }
  0x17   :  { %1233 = vmatmul.mubr.msk.bf16.gmra.mrb[4].mxu0 %vm78_vm0, %v1324_v9  ;;  %1265 = vmatmul.mubr.msk.bf16.gmra.mrb[4].mxu1 %vm78_vm0, %v1325_v10 }
  0x18   :  { %1236 = vmatprep.mubr.msk.bf16.mxu0 %vm78_vm0, %v1326_v11  ;;  %1268 = vmatprep.mubr.msk.bf16.mxu1 %vm78_vm0, %v1327_v12 }
  0x1f   :  { %1237 = vmatmul.mubr.msk.bf16.gmra.mrb[8].mxu0 %vm78_vm0, %v1328_v13  ;;  %1269 = vmatmul.mubr.msk.bf16.gmra.mrb[8].mxu1 %vm78_vm0, %v1329_v14 }
  0x20   :  { %1240 = vmatprep.mubr.msk.bf16.mxu0 %vm78_vm0, %v1330_v15  ;;  %1272 = vmatprep.mubr.msk.bf16.mxu1 %vm78_vm0, %v1331_v16 }
  0x27   :  { %1241 = vmatmul.mubr.msk.bf16.gmra.mrb[12].mxu0 %vm78_vm0, %v1332_v17  ;;  %1273 = vmatmul.mubr.msk.bf16.gmra.mrb[12].mxu1 %vm78_vm0, %v1333_v18 }
  0x28   :  { %1244 = vmatprep.mubr.msk.bf16.mxu0 %vm78_vm0, %v1334_v19  ;;  %1276 = vmatprep.mubr.msk.bf16.mxu1 %vm78_vm0, %v1335_v20 }
  0x2f   :  { %1245 = vmatmul.mubr.msk.bf16.gmra.mrb[16].mxu0 %vm78_vm0, %v1336_v21  ;;  %1277 = vmatmul.mubr.msk.bf16.gmra.mrb[16].mxu1 %vm78_vm0, %v1337_v22 }
  0x30   :  { %1248 = vmatprep.mubr.msk.bf16.mxu0 %vm78_vm0, %v1338_v23  ;;  %1280 = vmatprep.mubr.msk.bf16.mxu1 %vm78_vm0, %v1339_v24 }
  0x37   :  { %1249 = vmatmul.mubr.msk.bf16.gmra.mrb[20].mxu0 %vm78_vm0, %v1340_v25  ;;  %1281 = vmatmul.mubr.msk.bf16.gmra.mrb[20].mxu1 %vm78_vm0, %v1341_v26 }
  0x38   :  { %1252 = vmatprep.mubr.msk.bf16.mxu0 %vm78_vm0, %v1342_v27  ;;  %1284 = vmatprep.mubr.msk.bf16.mxu1 %vm78_vm0, %v1343_v28 }
  0x3f   :  { %1253 = vmatmul.mubr.msk.bf16.gmra.mrb[24].mxu0 %vm78_vm0, %v1344_v29  ;;  %1285 = vmatmul.mubr.msk.bf16.gmra.mrb[24].mxu1 %vm78_vm0, %v1345_v30 }
  0x40   :  { %1256 = vmatprep.mubr.msk.bf16.mxu0 %vm78_vm0, %v1346_v31  ;;  %1288 = vmatprep.mubr.msk.bf16.mxu1 %vm78_vm0, %v1347_v32 }
  0x47   :  { %1257 = vmatmul.mubr.msk.bf16.gmra.mrb[28].mxu0 %vm78_vm0, %v1348_v33  ;;  %1289 = vmatmul.mubr.msk.bf16.gmra.mrb[28].mxu1 %vm78_vm0, %v1349_v34 }
  0xe2   :  { %v1230_v36 = vpop.f32.mrb[0].mxu0  ;;  %v1262_v37 = vpop.f32.mrb[0].mxu1 }
  0xe3   :  { %v474_v38 = vadd.f32 %v1230_v36, %v1587_v35  ;;  %v602_v39 = vadd.f32 %v1262_v37, %v1587_v35  ;;  %v465_v40 = vpop.f32.mrb[1].mxu0  ;;  %v593_v41 = vpop.f32.mrb[1].mxu1 }
  0xe4   :  { %v466_v42 = vadd.f32 %v1587_v35, %v465_v40  ;;  %v594_v43 = vadd.f32 %v1587_v35, %v593_v41  ;;  %v1231_v44 = vpop.f32.mrb[2].mxu0  ;;  %v1263_v45 = vpop.f32.mrb[2].mxu1 }
  0xe5   :  { %722 = vst [vmem:[#allocation2 + $0x10] sm:$0xff] %v474_v38  ;;  %754 = vst [vmem:[#allocation2 + $0x110] sm:$0xff] %v602_v39  ;;  %v477_v46 = vadd.f32 %v1231_v44, %v1587_v35  ;;  %v605_v47 = vadd.f32 %v1263_v45, %v1587_v35  ;;  %v468_v48 = vpop.f32.mrb[3].mxu0  ;;  %v596_v49 = vpop.f32.mrb[3].mxu1 }
  0xe6   :  { %720 = vst [vmem:[#allocation2] sm:$0xff] %v466_v42  ;;  %752 = vst [vmem:[#allocation2 + $0x100] sm:$0xff] %v594_v43  ;;  %v469_v50 = vadd.f32 %v1587_v35, %v468_v48  ;;  %v597_v51 = vadd.f32 %v1587_v35, %v596_v49 }
  0xe7   :  { %723 = vst [vmem:[#allocation2 + $0x18] sm:$0xff] %v477_v46  ;;  %755 = vst [vmem:[#allocation2 + $0x118] sm:$0xff] %v605_v47 }
  0xe8   :  { %721 = vst [vmem:[#allocation2 + $0x8] sm:$0xff] %v469_v50  ;;  %753 = vst [vmem:[#allocation2 + $0x108] sm:$0xff] %v597_v51 }
  0xea   :  { %v1234_v52 = vpop.f32.mrb[4].mxu0  ;;  %v1266_v53 = vpop.f32.mrb[4].mxu1 }
  0xeb   :  { %v490_v54 = vadd.f32 %v1234_v52, %v1587_v35  ;;  %v618_v55 = vadd.f32 %v1266_v53, %v1587_v35  ;;  %v481_v56 = vpop.f32.mrb[5].mxu0  ;;  %v609_v57 = vpop.f32.mrb[5].mxu1 }
  0xec   :  { %v482_v58 = vadd.f32 %v1587_v35, %v481_v56  ;;  %v610_v59 = vadd.f32 %v1587_v35, %v609_v57  ;;  %v1235_v60 = vpop.f32.mrb[6].mxu0  ;;  %v1267_v61 = vpop.f32.mrb[6].mxu1 }
  0xed   :  { %726 = vst [vmem:[#allocation2 + $0x30] sm:$0xff] %v490_v54  ;;  %758 = vst [vmem:[#allocation2 + $0x130] sm:$0xff] %v618_v55  ;;  %v493_v62 = vadd.f32 %v1235_v60, %v1587_v35  ;;  %v621_v63 = vadd.f32 %v1267_v61, %v1587_v35  ;;  %v484_v0 = vpop.f32.mrb[7].mxu0  ;;  %v612_v1 = vpop.f32.mrb[7].mxu1 }
  0xee   :  { %724 = vst [vmem:[#allocation2 + $0x20] sm:$0xff] %v482_v58  ;;  %756 = vst [vmem:[#allocation2 + $0x120] sm:$0xff] %v610_v59  ;;  %v485_v2 = vadd.f32 %v1587_v35, %v484_v0  ;;  %v613_v3 = vadd.f32 %v1587_v35, %v612_v1 }
  0xef   :  { %727 = vst [vmem:[#allocation2 + $0x38] sm:$0xff] %v493_v62  ;;  %759 = vst [vmem:[#allocation2 + $0x138] sm:$0xff] %v621_v63 }
  0xf0   :  { %725 = vst [vmem:[#allocation2 + $0x28] sm:$0xff] %v485_v2  ;;  %757 = vst [vmem:[#allocation2 + $0x128] sm:$0xff] %v613_v3 }
  0xf2   :  { %v1238_v4 = vpop.f32.mrb[8].mxu0  ;;  %v1270_v5 = vpop.f32.mrb[8].mxu1 }
  0xf3   :  { %v506_v6 = vadd.f32 %v1238_v4, %v1587_v35  ;;  %v634_v7 = vadd.f32 %v1270_v5, %v1587_v35  ;;  %v497_v8 = vpop.f32.mrb[9].mxu0  ;;  %v625_v9 = vpop.f32.mrb[9].mxu1 }
  0xf4   :  { %v498_v10 = vadd.f32 %v1587_v35, %v497_v8  ;;  %v626_v11 = vadd.f32 %v1587_v35, %v625_v9  ;;  %v1239_v12 = vpop.f32.mrb[10].mxu0  ;;  %v1271_v13 = vpop.f32.mrb[10].mxu1 }
  0xf5   :  { %730 = vst [vmem:[#allocation2 + $0x50] sm:$0xff] %v506_v6  ;;  %762 = vst [vmem:[#allocation2 + $0x150] sm:$0xff] %v634_v7  ;;  %v509_v14 = vadd.f32 %v1239_v12, %v1587_v35  ;;  %v637_v15 = vadd.f32 %v1271_v13, %v1587_v35  ;;  %v500_v16 = vpop.f32.mrb[11].mxu0  ;;  %v628_v17 = vpop.f32.mrb[11].mxu1 }
  0xf6   :  { %728 = vst [vmem:[#allocation2 + $0x40] sm:$0xff] %v498_v10  ;;  %760 = vst [vmem:[#allocation2 + $0x140] sm:$0xff] %v626_v11  ;;  %v501_v18 = vadd.f32 %v1587_v35, %v500_v16  ;;  %v629_v19 = vadd.f32 %v1587_v35, %v628_v17 }
  0xf7   :  { %731 = vst [vmem:[#allocation2 + $0x58] sm:$0xff] %v509_v14  ;;  %763 = vst [vmem:[#allocation2 + $0x158] sm:$0xff] %v637_v15 }
  0xf8   :  { %729 = vst [vmem:[#allocation2 + $0x48] sm:$0xff] %v501_v18  ;;  %761 = vst [vmem:[#allocation2 + $0x148] sm:$0xff] %v629_v19 }
  0xfa   :  { %v1242_v20 = vpop.f32.mrb[12].mxu0  ;;  %v1274_v21 = vpop.f32.mrb[12].mxu1 }
  0xfb   :  { %v522_v22 = vadd.f32 %v1242_v20, %v1587_v35  ;;  %v650_v23 = vadd.f32 %v1274_v21, %v1587_v35  ;;  %v513_v24 = vpop.f32.mrb[13].mxu0  ;;  %v641_v25 = vpop.f32.mrb[13].mxu1 }
  0xfc   :  { %v514_v26 = vadd.f32 %v1587_v35, %v513_v24  ;;  %v642_v27 = vadd.f32 %v1587_v35, %v641_v25  ;;  %v1243_v28 = vpop.f32.mrb[14].mxu0  ;;  %v1275_v29 = vpop.f32.mrb[14].mxu1 }
  0xfd   :  { %734 = vst [vmem:[#allocation2 + $0x70] sm:$0xff] %v522_v22  ;;  %766 = vst [vmem:[#allocation2 + $0x170] sm:$0xff] %v650_v23  ;;  %v525_v30 = vadd.f32 %v1243_v28, %v1587_v35  ;;  %v653_v31 = vadd.f32 %v1275_v29, %v1587_v35  ;;  %v516_v32 = vpop.f32.mrb[15].mxu0  ;;  %v644_v33 = vpop.f32.mrb[15].mxu1 }
  0xfe   :  { %732 = vst [vmem:[#allocation2 + $0x60] sm:$0xff] %v514_v26  ;;  %764 = vst [vmem:[#allocation2 + $0x160] sm:$0xff] %v642_v27  ;;  %v517_v34 = vadd.f32 %v1587_v35, %v516_v32  ;;  %v645_v36 = vadd.f32 %v1587_v35, %v644_v33 }
  0xff   :  { %735 = vst [vmem:[#allocation2 + $0x78] sm:$0xff] %v525_v30  ;;  %767 = vst [vmem:[#allocation2 + $0x178] sm:$0xff] %v653_v31 }
 0x100   :  { %733 = vst [vmem:[#allocation2 + $0x68] sm:$0xff] %v517_v34  ;;  %765 = vst [vmem:[#allocation2 + $0x168] sm:$0xff] %v645_v36 }
 0x102   :  { %v1246_v37 = vpop.f32.mrb[16].mxu0  ;;  %v1278_v38 = vpop.f32.mrb[16].mxu1 }
 0x103   :  { %v538_v39 = vadd.f32 %v1246_v37, %v1587_v35  ;;  %v666_v40 = vadd.f32 %v1278_v38, %v1587_v35  ;;  %v529_v41 = vpop.f32.mrb[17].mxu0  ;;  %v657_v42 = vpop.f32.mrb[17].mxu1 }
 0x104   :  { %v530_v43 = vadd.f32 %v1587_v35, %v529_v41  ;;  %v658_v44 = vadd.f32 %v1587_v35, %v657_v42  ;;  %v1247_v45 = vpop.f32.mrb[18].mxu0  ;;  %v1279_v46 = vpop.f32.mrb[18].mxu1 }
 0x105   :  { %738 = vst [vmem:[#allocation2 + $0x90] sm:$0xff] %v538_v39  ;;  %770 = vst [vmem:[#allocation2 + $0x190] sm:$0xff] %v666_v40  ;;  %v541_v47 = vadd.f32 %v1247_v45, %v1587_v35  ;;  %v669_v48 = vadd.f32 %v1279_v46, %v1587_v35  ;;  %v532_v49 = vpop.f32.mrb[19].mxu0  ;;  %v660_v50 = vpop.f32.mrb[19].mxu1 }
 0x106   :  { %736 = vst [vmem:[#allocation2 + $0x80] sm:$0xff] %v530_v43  ;;  %768 = vst [vmem:[#allocation2 + $0x180] sm:$0xff] %v658_v44  ;;  %v533_v51 = vadd.f32 %v1587_v35, %v532_v49  ;;  %v661_v52 = vadd.f32 %v1587_v35, %v660_v50 }
 0x107   :  { %739 = vst [vmem:[#allocation2 + $0x98] sm:$0xff] %v541_v47  ;;  %771 = vst [vmem:[#allocation2 + $0x198] sm:$0xff] %v669_v48 }
 0x108   :  { %737 = vst [vmem:[#allocation2 + $0x88] sm:$0xff] %v533_v51  ;;  %769 = vst [vmem:[#allocation2 + $0x188] sm:$0xff] %v661_v52 }
 0x10a   :  { %v1250_v53 = vpop.f32.mrb[20].mxu0  ;;  %v1282_v54 = vpop.f32.mrb[20].mxu1 }
 0x10b   :  { %v554_v55 = vadd.f32 %v1250_v53, %v1587_v35  ;;  %v682_v56 = vadd.f32 %v1282_v54, %v1587_v35  ;;  %v545_v57 = vpop.f32.mrb[21].mxu0  ;;  %v673_v58 = vpop.f32.mrb[21].mxu1 }
 0x10c   :  { %v546_v59 = vadd.f32 %v1587_v35, %v545_v57  ;;  %v674_v60 = vadd.f32 %v1587_v35, %v673_v58  ;;  %v1251_v61 = vpop.f32.mrb[22].mxu0  ;;  %v1283_v62 = vpop.f32.mrb[22].mxu1 }
 0x10d   :  { %742 = vst [vmem:[#allocation2 + $0xb0] sm:$0xff] %v554_v55  ;;  %774 = vst [vmem:[#allocation2 + $0x1b0] sm:$0xff] %v682_v56  ;;  %v557_v63 = vadd.f32 %v1251_v61, %v1587_v35  ;;  %v685_v0 = vadd.f32 %v1283_v62, %v1587_v35  ;;  %v548_v1 = vpop.f32.mrb[23].mxu0  ;;  %v676_v2 = vpop.f32.mrb[23].mxu1 }
 0x10e   :  { %740 = vst [vmem:[#allocation2 + $0xa0] sm:$0xff] %v546_v59  ;;  %772 = vst [vmem:[#allocation2 + $0x1a0] sm:$0xff] %v674_v60  ;;  %v549_v3 = vadd.f32 %v1587_v35, %v548_v1  ;;  %v677_v4 = vadd.f32 %v1587_v35, %v676_v2 }
 0x10f   :  { %743 = vst [vmem:[#allocation2 + $0xb8] sm:$0xff] %v557_v63  ;;  %775 = vst [vmem:[#allocation2 + $0x1b8] sm:$0xff] %v685_v0 }
 0x110   :  { %741 = vst [vmem:[#allocation2 + $0xa8] sm:$0xff] %v549_v3  ;;  %773 = vst [vmem:[#allocation2 + $0x1a8] sm:$0xff] %v677_v4 }
 0x112   :  { %v1254_v5 = vpop.f32.mrb[24].mxu0  ;;  %v1286_v6 = vpop.f32.mrb[24].mxu1 }
 0x113   :  { %v570_v7 = vadd.f32 %v1254_v5, %v1587_v35  ;;  %v698_v8 = vadd.f32 %v1286_v6, %v1587_v35  ;;  %v561_v9 = vpop.f32.mrb[25].mxu0  ;;  %v689_v10 = vpop.f32.mrb[25].mxu1 }
 0x114   :  { %v562_v11 = vadd.f32 %v1587_v35, %v561_v9  ;;  %v690_v12 = vadd.f32 %v1587_v35, %v689_v10  ;;  %v1255_v13 = vpop.f32.mrb[26].mxu0  ;;  %v1287_v14 = vpop.f32.mrb[26].mxu1 }
 0x115   :  { %746 = vst [vmem:[#allocation2 + $0xd0] sm:$0xff] %v570_v7  ;;  %778 = vst [vmem:[#allocation2 + $0x1d0] sm:$0xff] %v698_v8  ;;  %v573_v15 = vadd.f32 %v1255_v13, %v1587_v35  ;;  %v701_v16 = vadd.f32 %v1287_v14, %v1587_v35  ;;  %v564_v17 = vpop.f32.mrb[27].mxu0  ;;  %v692_v18 = vpop.f32.mrb[27].mxu1 }
 0x116   :  { %744 = vst [vmem:[#allocation2 + $0xc0] sm:$0xff] %v562_v11  ;;  %776 = vst [vmem:[#allocation2 + $0x1c0] sm:$0xff] %v690_v12  ;;  %v565_v19 = vadd.f32 %v1587_v35, %v564_v17  ;;  %v693_v20 = vadd.f32 %v1587_v35, %v692_v18 }
 0x117   :  { %747 = vst [vmem:[#allocation2 + $0xd8] sm:$0xff] %v573_v15  ;;  %779 = vst [vmem:[#allocation2 + $0x1d8] sm:$0xff] %v701_v16 }
 0x118   :  { %745 = vst [vmem:[#allocation2 + $0xc8] sm:$0xff] %v565_v19  ;;  %777 = vst [vmem:[#allocation2 + $0x1c8] sm:$0xff] %v693_v20 }
 0x11a   :  { %v1258_v21 = vpop.f32.mrb[28].mxu0  ;;  %v1290_v22 = vpop.f32.mrb[28].mxu1 }
 0x11b   :  { %v586_v23 = vadd.f32 %v1258_v21, %v1587_v35  ;;  %v714_v24 = vadd.f32 %v1290_v22, %v1587_v35  ;;  %v577_v25 = vpop.f32.mrb[29].mxu0  ;;  %v705_v26 = vpop.f32.mrb[29].mxu1 }
 0x11c   :  { %v578_v27 = vadd.f32 %v1587_v35, %v577_v25  ;;  %v706_v28 = vadd.f32 %v1587_v35, %v705_v26  ;;  %v1259_v29 = vpop.f32.mrb[30].mxu0  ;;  %v1291_v30 = vpop.f32.mrb[30].mxu1 }
 0x11d   :  { %750 = vst [vmem:[#allocation2 + $0xf0] sm:$0xff] %v586_v23  ;;  %782 = vst [vmem:[#allocation2 + $0x1f0] sm:$0xff] %v714_v24  ;;  %v589_v31 = vadd.f32 %v1259_v29, %v1587_v35  ;;  %v717_v32 = vadd.f32 %v1291_v30, %v1587_v35  ;;  %v580_v33 = vpop.f32.mrb[31].mxu0  ;;  %v708_v34 = vpop.f32.mrb[31].mxu1 }
 0x11e   :  { %748 = vst [vmem:[#allocation2 + $0xe0] sm:$0xff] %v578_v27  ;;  %780 = vst [vmem:[#allocation2 + $0x1e0] sm:$0xff] %v706_v28  ;;  %v581_v36 = vadd.f32 %v1587_v35, %v580_v33  ;;  %v709_v37 = vadd.f32 %v1587_v35, %v708_v34 }
 0x11f   :  { %751 = vst [vmem:[#allocation2 + $0xf8] sm:$0xff] %v589_v31  ;;  %783 = vst [vmem:[#allocation2 + $0x1f8] sm:$0xff] %v717_v32 }
 0x120   :  { %749 = vst [vmem:[#allocation2 + $0xe8] sm:$0xff] %v581_v36  ;;  %781 = vst [vmem:[#allocation2 + $0x1e8] sm:$0xff] %v709_v37 }
 0x121 LB: > { %v1350_v38 = vld [vmem:[%s1461_s9] sm:$0xff]   ;;  %v1351_v39 = vld [vmem:[%s1461_s9 + $0x8] sm:$0xff]   ;;  %v792_v42 = vld [vmem:[#allocation3 + $0x10] sm:$0xff]  ;;  %s1164_s1 = sshll.u32 %s1390_s0, 5  ;;  %s1393_s19 = smov 64   ;;  %vm1060_vm1 = vcmask 257024   ;;  %s1390_s0 = sphi %s1653_s0, %s789_s0  }
 0x122   : > { %1292 = vmatprep.subr.bf16.mxu0 %v1350_v38  ;;  %v790_v40 = vld [vmem:[#allocation3] sm:$0xff]  ;;  %v791_v41 = vld [vmem:[#allocation3 + $0x8] sm:$0xff]  ;;  %v793_v43 = vld [vmem:[#allocation3 + $0x18] sm:$0xff]  ;;  %s795_s4 = scalar_lea.vmem [#allocation2], %s1164_s1  ;;  %s1394_s20 = smov 32  }
 0x123   : > { %1293 = vmatpush3.bf16.msra.mxu0 %v1350_v38  ;;  %v800_v35 = vpack.c.bf16 %v791_v41, %v790_v40  ;;  %v801_v44 = vpack.c.bf16 %v793_v43, %v792_v42  ;;  %v906_v61 = vld [vmem:[#allocation4 + $0x8] sm:$0xff]  ;;  %v905_v62 = vld [vmem:[#allocation4] sm:$0xff]  ;;  %v908_v63 = vld [vmem:[#allocation4 + $0x18] sm:$0xff]  ;;  %s1395_s21 = smov 96   ;;  %s1185_s22 = sshll.u32 %s1390_s0, 4 }
 0x124   : > { %1294 = vmatprep.subr.bf16.mxu0 %v1351_v39  ;;  %v907_v0 = vld [vmem:[#allocation4 + $0x10] sm:$0xff]  ;;  %s1059_s25 = scalar_lea.vmem %s1703_s5, %s1185_s22  ;;  %s789_s0 = sadd.s32 1, %s1390_s0  }
 0x125   : > { %1296 = vmatprep.mubr.msk.bf16.mxu0 %vm78_vm0, %v800_v35  ;;  %p786_p1 = scmp.ge.s32.totalorder %s789_s0, 16  }
 0x127   : > { %1295 = vmatpush3.bf16.msra.mxu0 %v1351_v39  ;;  %v798_v45 = vld [vmem:[%s795_s4 + $0x10] sm:$0xff]  ;;  %v796_v46 = vld [vmem:[%s795_s4] sm:$0xff]  ;;  %v799_v50 = vld [vmem:[%s795_s4 + $0x18] sm:$0xff] }
 0x128   : > { %v797_v53 = vld [vmem:[%s795_s4 + $0x8] sm:$0xff] }
 0x12a   : > { %1297 = vmatmul.mubr.msk.bf16.vlgmr.msra.gmra.mrb[0].mxu0 %vm78_vm0, %v801_v44 }
 0x1fd   : > { %v1298_v47 = vpop.f32.mrb[0].mxu0 }
 0x1fe   : > { %v875_v48 = vadd.f32 %v1298_v47, %v798_v45  ;;  %v858_v49 = vpop.f32.mrb[1].mxu0 }
 0x1ff   : > { %v873_v51 = vadd.f32 %v858_v49, %v796_v46  ;;  %v1299_v52 = vpop.f32.mrb[2].mxu0 }
 0x200   : > { %1352 = vtanh.f32 %v875_v48  ;;  %v861_v54 = vpop.f32.mrb[3].mxu0  ;;  %v876_v55 = vadd.f32 %v1299_v52, %v799_v50  ;;  %v1171_v2 = vmul.f32 -1.442695, %v875_v48 }
 0x201   : > { %1354 = vtanh.f32 %v873_v51  ;;  %v874_v56 = vadd.f32 %v861_v54, %v797_v53  ;;  %v1169_v1 = vmul.f32 -1.442695, %v873_v51 }
 0x202   : > { %1356 = vtanh.f32 %v876_v55  ;;  %v1172_v4 = vmul.f32 -1.442695, %v876_v55 }
 0x203   : > { %1358 = vtanh.f32 %v874_v56  ;;  %v1170_v3 = vmul.f32 -1.442695, %v874_v56 }
 0x204   : > { %1360 = vpow2.f32 %v1169_v1 }
 0x205   : > { %1362 = vpow2.f32 %v1171_v2 }
 0x206   : > { %1364 = vpow2.f32 %v1170_v3 }
 0x207   : > { %1366 = vpow2.f32 %v1172_v4 }
 0x20a   : > { %v1353_v57 = vpop.eup %1352 }
 0x20b   : > { %v1355_v58 = vpop.eup %1354  ;;  %937 = vrot.lane.b32.xlu1 %v1353_v57, %s1393_s19 }
 0x20c   : > { %933 = vrot.lane.b32.xlu0 %v1355_v58, %s1393_s19  ;;  %v1357_v59 = vpop.eup %1356 }
 0x20d   : > { %v1359_v60 = vpop.eup %1358 }
 0x20e   : > { %v1361_v5 = vpop.eup %1360 }
 0x20f   : > { %939 = vrot.lane.b32.xlu1 %v1357_v59, %s1393_s19  ;;  %v889_v6 = vadd.f32 1.0, %v1361_v5  ;;  %v1363_v7 = vpop.eup %1362 }
 0x210   : > { %935 = vrot.lane.b32.xlu0 %v1359_v60, %s1393_s19  ;;  %v1365_v8 = vpop.eup %1364  ;;  %v891_v9 = vadd.f32 1.0, %v1363_v7 }
 0x211   : > { %1368 = vrcp.f32 %v889_v6  ;;  %v890_v10 = vadd.f32 1.0, %v1365_v8  ;;  %v1367_v11 = vpop.eup %1366 }
 0x212   : > { %1370 = vrcp.f32 %v891_v9  ;;  %v892_v12 = vadd.f32 1.0, %v1367_v11 }
 0x213   : > { %915 = vrot.lane.b32.xlu1 %v906_v61, %s1394_s20  ;;  %1372 = vrcp.f32 %v890_v10 }
 0x214   : > { %913 = vrot.lane.b32.xlu0 %v905_v62, %s1394_s20  ;;  %1374 = vrcp.f32 %v892_v12 }
 0x217   : > { %919 = vrot.lane.b32.xlu1 %v908_v63, %s1394_s20 }
 0x218   : > { %917 = vrot.lane.b32.xlu0 %v907_v0, %s1394_s20 }
 0x21b   : > { %v1369_v13 = vpop.eup %1368 }
 0x21c   : > { %v1371_v17 = vpop.eup %1370 }
 0x21d   : > { %v1373_v19 = vpop.eup %1372 }
 0x21e   : > { %v1375_v23 = vpop.eup %1374 }
 0x27d   : > { %v938_v16 = vpop.permute.xlu1 %937 }
 0x27e   : > { %v934_v14 = vpop.permute.xlu0 %933  ;;  %v947_v18 = vmul.f32 %v1371_v17, %v938_v16 }
 0x27f   : > { %v945_v15 = vmul.f32 %v1369_v13, %v934_v14 }
 0x281   : > { %953 = vrot.lane.b32.xlu0 %v945_v15, %s1394_s20  ;;  %v940_v22 = vpop.permute.xlu1 %939 }
 0x282   : > { %v936_v20 = vpop.permute.xlu0 %935  ;;  %v948_v24 = vmul.f32 %v1375_v23, %v940_v22 }
 0x283   : > { %v946_v21 = vmul.f32 %v1373_v19, %v936_v20 }
 0x285   : > { %957 = vrot.lane.b32.xlu0 %v947_v18, %s1394_s20  ;;  %955 = vrot.lane.b32.xlu1 %v946_v21, %s1394_s20  ;;  %v916_v26 = vpop.permute.xlu1 %915 }
 0x286   : > { %v914_v25 = vpop.permute.xlu0 %913  ;;  %v926_v34 = vmul.f32 %v1373_v19, %v916_v26 }
 0x287   : > { %v925_v28 = vmul.f32 %v1369_v13, %v914_v25 }
 0x289   : > { %959 = vrot.lane.b32.xlu1 %v948_v24, %s1394_s20  ;;  %v920_v31 = vpop.permute.xlu1 %919 }
 0x28a   : > { %v918_v27 = vpop.permute.xlu0 %917  ;;  %v928_v39 = vmul.f32 %v1375_v23, %v920_v31 }
 0x28b   : > { %v927_v32 = vmul.f32 %v1371_v17, %v918_v27 }
 0x2f3   : > { %v954_v29 = vpop.permute.xlu0 %953 }
 0x2f4   : > { %v965_v30 = vadd.f32 %v954_v29, %v925_v28 }
 0x2f6   : > { %1376 = vtanh.f32 %v965_v30 }
 0x2f7   : > { %v958_v33 = vpop.permute.xlu0 %957  ;;  %v956_v37 = vpop.permute.xlu1 %955 }
 0x2f8   : > { %v967_v36 = vadd.f32 %v958_v33, %v927_v32  ;;  %v966_v38 = vadd.f32 %v956_v37, %v926_v34 }
 0x2fa   : > { %1378 = vtanh.f32 %v967_v36 }
 0x2fb   : > { %1380 = vtanh.f32 %v966_v38  ;;  %v960_v40 = vpop.permute.xlu1 %959 }
 0x2fc   : > { %v968_v41 = vadd.f32 %v960_v40, %v928_v39 }
 0x2fe   : > { %1382 = vtanh.f32 %v968_v41 }
 0x300   : > { %v1377_v35 = vpop.eup %1376 }
 0x301   : > { %977 = vrot.lane.b32.xlu0 %v1377_v35, %s1393_s19 }
 0x304   : > { %v1379_v42 = vpop.eup %1378 }
 0x305   : > { %981 = vrot.lane.b32.xlu0 %v1379_v42, %s1393_s19  ;;  %v1381_v43 = vpop.eup %1380 }
 0x306   : > { %979 = vrot.lane.b32.xlu1 %v1381_v43, %s1393_s19 }
 0x308   : > { %v1383_v44 = vpop.eup %1382 }
 0x309   : > { %997 = vrot.lane.b32.xlu0 %v965_v30, %s1395_s21 }
 0x30a   : > { %983 = vrot.lane.b32.xlu1 %v1383_v44, %s1393_s19 }
 0x30d   : > { %1001 = vrot.lane.b32.xlu0 %v967_v36, %s1395_s21 }
 0x30e   : > { %999 = vrot.lane.b32.xlu1 %v966_v38, %s1395_s21 }
 0x312   : > { %1003 = vrot.lane.b32.xlu1 %v968_v41, %s1395_s21 }
 0x373   : > { %v978_v45 = vpop.permute.xlu0 %977 }
 0x374   : > { %v989_v50 = vmul.f32 %v1369_v13, %v978_v45 }
 0x376   : > { %v1181_v54 = vpack.c.bf16 %v989_v50, %v989_v50 }
 0x377   : > { %v982_v46 = vpop.permute.xlu0 %981 }
 0x378   : > { %v991_v47 = vmul.f32 %v1371_v17, %v982_v46  ;;  %v980_v48 = vpop.permute.xlu1 %979 }
 0x379   : > { %v990_v56 = vmul.f32 %v1373_v19, %v980_v48 }
 0x37a   : > { %1021 = vrot.lane.b32.xlu0 %v991_v47, %s1394_s20  ;;  %v1183_v57 = vpack.c.bf16 %v991_v47, %v991_v47 }
 0x37b   : > { %v998_v49 = vpop.permute.xlu0 %997  ;;  %v1182_v59 = vpack.c.bf16 %v990_v56, %v990_v56 }
 0x37c   : > { %1009 = vst.msk [vmem:[#allocation4] sm:$0xff] %vm78_vm0, %v998_v49  ;;  %v984_v51 = vpop.permute.xlu1 %983 }
 0x37d   : > { %v992_v52 = vmul.f32 %v1375_v23, %v984_v51 }
 0x37e   : > { %1017 = vrot.lane.b32.xlu0 %v989_v50, %s1394_s20 }
 0x37f   : > { %v1002_v53 = vpop.permute.xlu0 %1001  ;;  %1023 = vrot.lane.b32.xlu1 %v992_v52, %s1394_s20  ;;  %v1184_v60 = vpack.c.bf16 %v992_v52, %v992_v52 }
 0x380   : > { %1011 = vst.msk [vmem:[#allocation4 + $0x10] sm:$0xff] %vm78_vm0, %v1002_v53  ;;  %v1000_v55 = vpop.permute.xlu1 %999 }
 0x381   : > { %1010 = vst.msk [vmem:[#allocation4 + $0x8] sm:$0xff] %vm78_vm0, %v1000_v55 }
 0x382   : > { %1045 = vrot.lane.b32.xlu0 %v1181_v54, %s1394_s20 }
 0x383   : > { %1019 = vrot.lane.b32.xlu1 %v990_v56, %s1394_s20 }
 0x384   : > { %v1004_v58 = vpop.permute.xlu1 %1003 }
 0x385   : > { %1012 = vst.msk [vmem:[#allocation4 + $0x18] sm:$0xff] %vm78_vm0, %v1004_v58 }
 0x386   : > { %1049 = vrot.lane.b32.xlu0 %v1183_v57, %s1394_s20 }
 0x387   : > { %1047 = vrot.lane.b32.xlu1 %v1182_v59, %s1394_s20 }
 0x38b   : > { %1051 = vrot.lane.b32.xlu1 %v1184_v60, %s1394_s20 }
 0x3ec   : > { %v1022_v61 = vpop.permute.xlu0 %1021 }
 0x3ed   : > { %1031 = vst.msk [vmem:[#allocation3 + $0x10] sm:$0xff] %vm78_vm0, %v1022_v61 }
 0x3f0   : > { %v1018_v62 = vpop.permute.xlu0 %1017 }
 0x3f1   : > { %1029 = vst.msk [vmem:[#allocation3] sm:$0xff] %vm78_vm0, %v1018_v62  ;;  %v1024_v63 = vpop.permute.xlu1 %1023 }
 0x3f2   : > { %1032 = vst.msk [vmem:[#allocation3 + $0x18] sm:$0xff] %vm78_vm0, %v1024_v63 }
 0x3f4   : > { %v1046_v0 = vpop.permute.xlu0 %1045 }
 0x3f5   : > { %1061 = vst.msk [vmem:[%s1059_s25] sm:$0xf] %vm1060_vm1, %v1046_v0  ;;  %v1020_v1 = vpop.permute.xlu1 %1019 }
 0x3f6   : > { %1030 = vst.msk [vmem:[#allocation3 + $0x8] sm:$0xff] %vm78_vm0, %v1020_v1 }
 0x3f8   : > { %v1050_v2 = vpop.permute.xlu0 %1049 }
 0x3f9   : > { %1063 = vst.msk [vmem:[%s1059_s25 + $0x8] sm:$0xf] %vm1060_vm1, %v1050_v2  ;;  %v1048_v3 = vpop.permute.xlu1 %1047 }
 0x3fa   : > { %1062 = vst.msk [vmem:[%s1059_s25 + $0x4] sm:$0xf] %vm1060_vm1, %v1048_v3  ;;  %788 = sbr.rel (!%p786_p1) target bundleno = 289 (0x121), region = 58 }
 0x3fd   : > { %v1052_v4 = vpop.permute.xlu1 %1051 }
 0x3fe   : > { %1064 = vst.msk [vmem:[%s1059_s25 + $0xc] sm:$0xf] %vm1060_vm1, %v1052_v4 }

</bundles_post_ra>
